<compile_context>
chip_gen: v6e
topology: v6e:2x2x1
jax: 0.10.0
libtpu: 0.0.40
codegen_flags: <defaults>
</compile_context>

<pallas_src>
import jax
import jax.numpy as jnp
from jax.experimental import pallas as pl
from jax.experimental.pallas import tpu as pltpu

SMOOTH = 1e-06
_LANES = 128
_SUBLANES = 8
_MAX_BLOCK_ROWS = 2048  # (2048, 128) f32 = 1 MiB per input block


def _dice_bce_sums_kernel(logit_ref, target_ref, out_ref, acc_ref):
    """Accumulate per-lane partials of [bce, p*t, p, t]; finalize to SMEM."""

    @pl.when(pl.program_id(0) == 0)
    def _init():
        acc_ref[...] = jnp.zeros_like(acc_ref)

    x = logit_ref[...].astype(jnp.float32)
    t = target_ref[...].astype(jnp.float32)

    p = jax.nn.sigmoid(x)
    # Numerically stable BCE-with-logits:
    #   -(t*log(p) + (1-t)*log(1-p)) == softplus(x) - t*x
    bce = jax.nn.softplus(x) - t * x

    # Per-lane partial sums (sublane-axis reduce), accumulated across blocks.
    acc_ref[0:1, :] += jnp.sum(bce, axis=0, keepdims=True)
    acc_ref[1:2, :] += jnp.sum(p * t, axis=0, keepdims=True)
    acc_ref[2:3, :] += jnp.sum(p, axis=0, keepdims=True)
    acc_ref[3:4, :] += jnp.sum(t, axis=0, keepdims=True)

    @pl.when(pl.program_id(0) == pl.num_programs(0) - 1)
    def _finalize():
        # Single cross-lane (XLU) reduction per output scalar, once per call.
        out_ref[0] = jnp.sum(acc_ref[0:1, :])
        out_ref[1] = jnp.sum(acc_ref[1:2, :])
        out_ref[2] = jnp.sum(acc_ref[2:3, :])
        out_ref[3] = jnp.sum(acc_ref[3:4, :])


@jax.jit
def dice_bce_loss(pred_logits, true_mask):
    """Matches DiceBCELoss.forward(pred_mask, true_mask) from the PyTorch module."""
    n = pred_logits.size
    rows = pl.cdiv(n, _LANES)
    rows8 = pl.cdiv(rows, _SUBLANES) * _SUBLANES
    block_rows = min(_MAX_BLOCK_ROWS, rows8)
    rows_pad = pl.cdiv(rows8, block_rows) * block_rows
    n_pad = rows_pad * _LANES

    logits_flat = pred_logits.reshape(-1)
    target_flat = true_mask.reshape(-1)
    if n_pad != n:
        # Pad logits with a large negative and targets with 0 so padded
        # elements contribute ~0 to all four sums -> no mask array needed.
        logits_flat = jnp.pad(logits_flat, (0, n_pad - n), constant_values=-100.0)
        target_flat = jnp.pad(target_flat, (0, n_pad - n), constant_values=0.0)
    logits_2d = logits_flat.reshape(rows_pad, _LANES)
    target_2d = target_flat.reshape(rows_pad, _LANES)

    grid = (rows_pad // block_rows,)
    tile_spec = pl.BlockSpec((block_rows, _LANES), lambda i: (i, 0))

    sums = pl.pallas_call(
        _dice_bce_sums_kernel,
        out_shape=jax.ShapeDtypeStruct((4,), jnp.float32),
        grid_spec=pltpu.PrefetchScalarGridSpec(
            num_scalar_prefetch=0,
            grid=grid,
            in_specs=[tile_spec, tile_spec],
            out_specs=pl.BlockSpec(memory_space=pltpu.SMEM),
            scratch_shapes=[pltpu.VMEM((8, _LANES), jnp.float32)]),
        compiler_params=pltpu.CompilerParams(
            dimension_semantics=("arbitrary",)),
    )(logits_2d, target_2d)

    sum_bce, intersection, sum_p, sum_t = sums[0], sums[1], sums[2], sums[3]
    total = sum_p + sum_t
    dice_loss = 1.0 - (2.0 * intersection + SMOOTH) / (total + SMOOTH)
    bce = sum_bce / jnp.float32(n)
    return bce + dice_loss


def _reference(pred_logits, true_mask):
    p = jax.nn.sigmoid(pred_logits.astype(jnp.float32)).reshape(-1)
    t = true_mask.astype(jnp.float32).reshape(-1)
    inter = jnp.sum(p * t)
    total = jnp.sum(p) + jnp.sum(t)
    dice = 1.0 - (2.0 * inter + SMOOTH) / (total + SMOOTH)
    eps = 1e-12
    bce = jnp.mean(-(t * jnp.log(p + eps) + (1.0 - t) * jnp.log(1.0 - p + eps)))
    return bce + dice


if __name__ == "__main__":
    key = jax.random.PRNGKey(0)
    k1, k2 = jax.random.split(key)
    # Small shapes consistent with a segmentation mask: NCHW = (2, 4, 16, 16)
    pred_logits = jax.random.normal(k1, (2, 4, 16, 16), dtype=jnp.float32)
    true_mask = (jax.random.uniform(k2, (2, 4, 16, 16)) > 0.5).astype(jnp.float32)

    out = dice_bce_loss(pred_logits, true_mask)
    out = jax.block_until_ready(out)

    ref = _reference(pred_logits, true_mask)
    assert jnp.allclose(out, ref, atol=1e-4, rtol=1e-4), (out, ref)
    print("KERNEL_OK")
</pallas_src>

<mosaic_0001>
module attributes {stable_mosaic.version = 11 : i64} {
  func.func @_dice_bce_sums_kernel(%arg0: i32, %arg1: memref<16x128xf32, #tpu.memory_space<vmem>>, %arg2: memref<16x128xf32, #tpu.memory_space<vmem>>, %arg3: memref<4xf32, #tpu.memory_space<smem>>, %arg4: memref<8x128xf32, #tpu.memory_space<vmem>>) attributes {dimension_semantics = [#tpu.dimension_semantics<arbitrary>], iteration_bounds = array<i64: 1>, scalar_prefetch = 0 : i64, scratch_operands = 1 : i64, tpu.core_type = #tpu.core_type<tc>, window_params = [{transform_indices = @transform_0, window_bounds = array<i64: 16, 128>}, {transform_indices = @transform_1, window_bounds = array<i64: 16, 128>}, {transform_indices = @transform_2, window_bounds = array<i64: 4>}]} {
    %c0_i32 = arith.constant 0 : i32
    %0 = arith.cmpi eq, %arg0, %c0_i32 : i32
    %1 = arith.extui %0 : i1 to i32
    %c0_i32_0 = arith.constant 0 : i32
    %2 = arith.cmpi ne, %1, %c0_i32_0 : i32
    scf.if %2 {
      %cst_25 = arith.constant 0.000000e+00 : f32
      %50 = vector.broadcast %cst_25 : f32 to vector<8x128xf32>
      %c0_26 = arith.constant 0 : index
      %c0_27 = arith.constant 0 : index
      %51 = vector.load %arg4[%c0_26, %c0_27] : memref<8x128xf32, #tpu.memory_space<vmem>>, vector<8x128xf32>
      tpu.vector_store %arg4[%c0_26, %c0_27], %50 {strides = array<i32>} : memref<8x128xf32, #tpu.memory_space<vmem>>, vector<8x128xf32>,
    } else {
    }
    %c0 = arith.constant 0 : index
    %c0_1 = arith.constant 0 : index
    %3 = vector.load %arg1[%c0, %c0_1] : memref<16x128xf32, #tpu.memory_space<vmem>>, vector<16x128xf32>
    %c0_2 = arith.constant 0 : index
    %c0_3 = arith.constant 0 : index
    %4 = vector.load %arg2[%c0_2, %c0_3] : memref<16x128xf32, #tpu.memory_space<vmem>>, vector<16x128xf32>
    %5 = arith.negf %3 : vector<16x128xf32>
    %6 = math.exp %5 : vector<16x128xf32>
    %cst = arith.constant 1.000000e+00 : f32
    %7 = vector.broadcast %cst : f32 to vector<16x128xf32>
    %8 = arith.addf %7, %6 : vector<16x128xf32>
    %9 = arith.divf %7, %8 : vector<16x128xf32>
    %cst_4 = arith.constant 0.000000e+00 : f32
    %10 = vector.broadcast %cst_4 : f32 to vector<16x128xf32>
    %11 = arith.maximumf %3, %10 : vector<16x128xf32>
    %12 = vector.broadcast %cst_4 : f32 to vector<16x128xf32>
    %13 = arith.subf %3, %12 : vector<16x128xf32>
    %14 = arith.cmpf one, %13, %13 : vector<16x128xf32>
    %15 = vector.broadcast %cst_4 : f32 to vector<16x128xf32>
    %16 = arith.addf %3, %15 : vector<16x128xf32>
    %17 = math.absf %13 : vector<16x128xf32>
    %cst_5 = arith.constant 0.000000e+00 : f32
    %18 = vector.broadcast %cst_5 : f32 to vector<16x128xf32>
    %19 = arith.subf %18, %17 : vector<16x128xf32>
    %20 = math.exp %19 : vector<16x128xf32>
    %21 = math.log1p %20 : vector<16x128xf32>
    %22 = arith.addf %11, %21 : vector<16x128xf32>
    %23 = arith.select %14, %16, %22 : vector<16x128xi1>, vector<16x128xf32>
    %24 = arith.mulf %4, %3 : vector<16x128xf32>
    %25 = arith.subf %23, %24 : vector<16x128xf32>
    %c0_6 = arith.constant 0 : index
    %c0_7 = arith.constant 0 : index
    %26 = vector.load %arg4[%c0_6, %c0_7] : memref<8x128xf32, #tpu.memory_space<vmem>>, vector<1x128xf32>
    %cst_8 = arith.constant dense<0.000000e+00> : vector<128xf32>
    %27 = vector.multi_reduction <add>, %25, %cst_8 [0] : vector<16x128xf32> to vector<128xf32>
    %28 = vector.shape_cast %27 : vector<128xf32> to vector<1x128xf32>
    %29 = arith.addf %26, %28 : vector<1x128xf32>
    %c0_9 = arith.constant 0 : index
    %c0_10 = arith.constant 0 : index
    %30 = vector.load %arg4[%c0_9, %c0_10] : memref<8x128xf32, #tpu.memory_space<vmem>>, vector<1x128xf32>
    tpu.vector_store %arg4[%c0_9, %c0_10], %29 {strides = array<i32>} : memref<8x128xf32, #tpu.memory_space<vmem>>, vector<1x128xf32>,
    %c1 = arith.constant 1 : index
    %c0_11 = arith.constant 0 : index
    %31 = vector.load %arg4[%c1, %c0_11] : memref<8x128xf32, #tpu.memory_space<vmem>>, vector<1x128xf32>
    %32 = arith.mulf %9, %4 : vector<16x128xf32>
    %cst_12 = arith.constant dense<0.000000e+00> : vector<128xf32>
    %33 = vector.multi_reduction <add>, %32, %cst_12 [0] : vector<16x128xf32> to vector<128xf32>
    %34 = vector.shape_cast %33 : vector<128xf32> to vector<1x128xf32>
    %35 = arith.addf %31, %34 : vector<1x128xf32>
    %c1_13 = arith.constant 1 : index
    %c0_14 = arith.constant 0 : index
    %36 = vector.load %arg4[%c1_13, %c0_14] : memref<8x128xf32, #tpu.memory_space<vmem>>, vector<1x128xf32>
    tpu.vector_store %arg4[%c1_13, %c0_14], %35 {strides = array<i32>} : memref<8x128xf32, #tpu.memory_space<vmem>>, vector<1x128xf32>,
    %c2 = arith.constant 2 : index
    %c0_15 = arith.constant 0 : index
    %37 = vector.load %arg4[%c2, %c0_15] : memref<8x128xf32, #tpu.memory_space<vmem>>, vector<1x128xf32>
    %cst_16 = arith.constant dense<0.000000e+00> : vector<128xf32>
    %38 = vector.multi_reduction <add>, %9, %cst_16 [0] : vector<16x128xf32> to vector<128xf32>
    %39 = vector.shape_cast %38 : vector<128xf32> to vector<1x128xf32>
    %40 = arith.addf %37, %39 : vector<1x128xf32>
    %c2_17 = arith.constant 2 : index
    %c0_18 = arith.constant 0 : index
    %41 = vector.load %arg4[%c2_17, %c0_18] : memref<8x128xf32, #tpu.memory_space<vmem>>, vector<1x128xf32>
    tpu.vector_store %arg4[%c2_17, %c0_18], %40 {strides = array<i32>} : memref<8x128xf32, #tpu.memory_space<vmem>>, vector<1x128xf32>,
    %c3 = arith.constant 3 : index
    %c0_19 = arith.constant 0 : index
    %42 = vector.load %arg4[%c3, %c0_19] : memref<8x128xf32, #tpu.memory_space<vmem>>, vector<1x128xf32>
    %cst_20 = arith.constant dense<0.000000e+00> : vector<128xf32>
    %43 = vector.multi_reduction <add>, %4, %cst_20 [0] : vector<16x128xf32> to vector<128xf32>
    %44 = vector.shape_cast %43 : vector<128xf32> to vector<1x128xf32>
    %45 = arith.addf %42, %44 : vector<1x128xf32>
    %c3_21 = arith.constant 3 : index
    %c0_22 = arith.constant 0 : index
    %46 = vector.load %arg4[%c3_21, %c0_22] : memref<8x128xf32, #tpu.memory_space<vmem>>, vector<1x128xf32>
    tpu.vector_store %arg4[%c3_21, %c0_22], %45 {strides = array<i32>} : memref<8x128xf32, #tpu.memory_space<vmem>>, vector<1x128xf32>,
    %c0_i32_23 = arith.constant 0 : i32
    %47 = arith.cmpi eq, %arg0, %c0_i32_23 : i32
    %48 = arith.extui %47 : i1 to i32
    %c0_i32_24 = arith.constant 0 : i32
    %49 = arith.cmpi ne, %48, %c0_i32_24 : i32
    scf.if %49 {
      %c0_25 = arith.constant 0 : index
      %c0_26 = arith.constant 0 : index
      %50 = vector.load %arg4[%c0_25, %c0_26] : memref<8x128xf32, #tpu.memory_space<vmem>>, vector<1x128xf32>
      %51 = vector.shape_cast %50 : vector<1x128xf32> to vector<1x1x128xf32>
      %cst_27 = arith.constant dense<0.000000e+00> : vector<1xf32>
      %52 = vector.multi_reduction <add>, %51, %cst_27 [1, 2] : vector<1x1x128xf32> to vector<1xf32>
      %53 = vector.shape_cast %52 : vector<1xf32> to vector<1x1x1xf32>
      %54 = vector.extract %53[0, 0, 0] : f32 from vector<1x1x1xf32>
      %c0_28 = arith.constant 0 : index
      %55 = memref.load %arg3[%c0_28] : memref<4xf32, #tpu.memory_space<smem>>
      memref.store %54, %arg3[%c0_28] : memref<4xf32, #tpu.memory_space<smem>>
      %c1_29 = arith.constant 1 : index
      %c0_30 = arith.constant 0 : index
      %56 = vector.load %arg4[%c1_29, %c0_30] : memref<8x128xf32, #tpu.memory_space<vmem>>, vector<1x128xf32>
      %57 = vector.shape_cast %56 : vector<1x128xf32> to vector<1x1x128xf32>
      %cst_31 = arith.constant dense<0.000000e+00> : vector<1xf32>
      %58 = vector.multi_reduction <add>, %57, %cst_31 [1, 2] : vector<1x1x128xf32> to vector<1xf32>
      %59 = vector.shape_cast %58 : vector<1xf32> to vector<1x1x1xf32>
      %60 = vector.extract %59[0, 0, 0] : f32 from vector<1x1x1xf32>
      %c1_32 = arith.constant 1 : index
      %61 = memref.load %arg3[%c1_32] : memref<4xf32, #tpu.memory_space<smem>>
      memref.store %60, %arg3[%c1_32] : memref<4xf32, #tpu.memory_space<smem>>
      %c2_33 = arith.constant 2 : index
      %c0_34 = arith.constant 0 : index
      %62 = vector.load %arg4[%c2_33, %c0_34] : memref<8x128xf32, #tpu.memory_space<vmem>>, vector<1x128xf32>
      %63 = vector.shape_cast %62 : vector<1x128xf32> to vector<1x1x128xf32>
      %cst_35 = arith.constant dense<0.000000e+00> : vector<1xf32>
      %64 = vector.multi_reduction <add>, %63, %cst_35 [1, 2] : vector<1x1x128xf32> to vector<1xf32>
      %65 = vector.shape_cast %64 : vector<1xf32> to vector<1x1x1xf32>
      %66 = vector.extract %65[0, 0, 0] : f32 from vector<1x1x1xf32>
      %c2_36 = arith.constant 2 : index
      %67 = memref.load %arg3[%c2_36] : memref<4xf32, #tpu.memory_space<smem>>
      memref.store %66, %arg3[%c2_36] : memref<4xf32, #tpu.memory_space<smem>>
      %c3_37 = arith.constant 3 : index
      %c0_38 = arith.constant 0 : index
      %68 = vector.load %arg4[%c3_37, %c0_38] : memref<8x128xf32, #tpu.memory_space<vmem>>, vector<1x128xf32>
      %69 = vector.shape_cast %68 : vector<1x128xf32> to vector<1x1x128xf32>
      %cst_39 = arith.constant dense<0.000000e+00> : vector<1xf32>
      %70 = vector.multi_reduction <add>, %69, %cst_39 [1, 2] : vector<1x1x128xf32> to vector<1xf32>
      %71 = vector.shape_cast %70 : vector<1xf32> to vector<1x1x1xf32>
      %72 = vector.extract %71[0, 0, 0] : f32 from vector<1x1x1xf32>
      %c3_40 = arith.constant 3 : index
      %73 = memref.load %arg3[%c3_40] : memref<4xf32, #tpu.memory_space<smem>>
      memref.store %72, %arg3[%c3_40] : memref<4xf32, #tpu.memory_space<smem>>
    } else {
    }
    return
  }
  func.func @transform_0(%arg0: i32) -> (i32, i32) {
    %c0_i32 = arith.constant 0 : i32
    %c0_i32_0 = arith.constant 0 : i32
    return %arg0, %c0_i32 : i32, i32
  }
  func.func @transform_1(%arg0: i32) -> (i32, i32) {
    %c0_i32 = arith.constant 0 : i32
    %c0_i32_0 = arith.constant 0 : i32
    return %arg0, %c0_i32 : i32, i32
  }
  func.func @transform_2(%arg0: i32) -> i32 {
    %c0_i32 = arith.constant 0 : i32
    %c0_i32_0 = arith.constant 0 : i32
    return %c0_i32 : i32
  }
}

</mosaic_0001>

<bundles_post_ra>
// kernel: dice_bce_loss.1
= control target key start
LH: loop header
LB: loop body
LE: loop exit
PB: predicated region body
PF: predicated region fallthrough
CT: control target
= control target key end

     0   :  { %v228_v2 = vmov 0.0   ;;  %s288_s0 = inlined_call_operand.vmem [shape: f32[16,128], index: 0, kind: input, shape index: {}]   ;;  %s289_s1 = inlined_call_operand.vmem [shape: f32[16,128], index: 1, kind: input, shape index: {}]   ;;  %s290_s2 = inlined_call_operand.vmem [shape: f32[4], index: 2, kind: output, shape index: {}]  }
   0x1   :  { %v248_v0 = vld [vmem:[%s288_s0] sm:$0xff]  ;;  %v253_v1 = vld [vmem:[%s288_s0 + $0x8] sm:$0xff]  ;;  %16 = vst [vmem:[#allocation2] sm:$0xff] %v228_v2 }
   0x2   :  { %v186_v3 = vmul.f32 -1.442695, %v248_v0  ;;  %v187_v4 = vmul.f32 -1.442695, %v253_v1  ;;  %v39_v5 = vand.u32 2147483647, %v248_v0 }
   0x3   :  { %v40_v6 = vand.u32 2147483647, %v253_v1  ;;  %v19_v7 = vld [vmem:[%s289_s1] sm:$0xff]  ;;  %v20_v8 = vld [vmem:[%s289_s1 + $0x8] sm:$0xff] }
   0x4   :  { %198 = vpow2.f32 %v186_v3  ;;  %v41_v9 = vsub.f32 0.0, %v39_v5  ;;  %v106_v10 = vadd.f32 %v20_v8, %v19_v7 }
   0x5   :  { %7 = vsyncpa [#allocation4], 0  ;;  %200 = vpow2.f32 %v187_v4  ;;  %v42_v11 = vsub.f32 0.0, %v40_v6  ;;  %v33_v41 = vmax.f32 %v248_v0, 0.0  ;;  %v34_v49 = vmax.f32 %v253_v1, 0.0  ;;  %s177_s18 = sshll.u32 %s290_s2, 4  ;;  %s178_s18 = int_to_ptr.vmem [resolvable:$true] %s177_s18 }
   0x6   :  { %v43_v12 = vmul.f32 1.442695, %v41_v9  ;;  %v107_v13 = vrot.slane %v106_v10, 4  ;;  %vm35_vm2 = vcmp.ne.f32.partialorder %v248_v0, %v248_v0  ;;  %vm36_vm3 = vcmp.ne.f32.partialorder %v253_v1, %v253_v1  ;;  %s214_s22 = scalar_lea.vmem %s178_s18, 16  ;;  %p219_p1 = scmp.lt.s32.totalorder %s178_s18, %s178_s18 }
   0x7   :  { %v45_v14 = vmul.f32 1.442695, %v42_v11  ;;  %v69_v55 = vmul.f32 %v19_v7, %v248_v0  ;;  %v70_v56 = vmul.f32 %v20_v8, %v253_v1  ;;  %vm119_vm4 = vcmask 1040384   ;;  %p215_p0 = scmp.ne.s32.totalorder %s178_s18, %s214_s22  ;;  %p220_p2 = scmp.lt.s32.totalorder %s214_s22, %s214_s22 }
   0x8   :  { %202 = vpow2.f32 %v43_v12  ;;  %v108_v15 = vadd.f32 %v107_v13, %v106_v10  ;;  %v105_v19 = vld [vmem:[#allocation2 + $0x3] sm:$0x1]  ;;  %v95_v10 = vld [vmem:[#allocation2 + $0x2] sm:$0x1] }
   0x9   :  { %204 = vpow2.f32 %v45_v14  ;;  %p221_p3 = por %p220_p2, %p219_p1 }
   0xa   :  { %v109_v16 = vrot.slane %v108_v15, 2 }
   0xb   :  { %p222_p4 = pnand %p221_p3, %p215_p0 }
   0xc   :  { %v110_v17 = vadd.f32 %v109_v16, %v108_v15 }
   0xe   :  { %v111_v18 = vrot.slane %v110_v17, 1 }
  0x10   :  { %v112_v20 = vadd.f32 %v111_v18, %v110_v17 }
  0x11   :  { %v199_v21 = vpop.eup %198 }
  0x12   :  { %v201_v22 = vpop.eup %200  ;;  %v27_v23 = vadd.f32 1.0, %v199_v21  ;;  %v113_v24 = vadd.f32 %v112_v20, %v105_v19  ;;  %v73_v21 = vld [vmem:[#allocation2] sm:$0x1] }
  0x13   :  { %v28_v25 = vadd.f32 1.0, %v201_v22 }
  0x14   :  { %206 = vrcp.f32 %v27_v23  ;;  %114 = vst [vmem:[#allocation2 + $0x3] sm:$0x1] %v113_v24 }
  0x15   :  { %v203_v26 = vpop.eup %202  ;;  %208 = vrcp.f32 %v28_v25 }
  0x16   :  { %v205_v27 = vpop.eup %204  ;;  %v47_v28 = vadd.f32 1.0, %v203_v26  ;;  %v50_v30 = vmul.f32 -0.5, %v203_v26  ;;  %v53_v34 = vand.u32 2147483647, %v203_v26 }
  0x17   :  { %v56_v29 = vadd.f32 1.0, %v205_v27  ;;  %v59_v31 = vmul.f32 -0.5, %v205_v27  ;;  %v62_v37 = vand.u32 2147483647, %v205_v27 }
  0x18   :  { %210 = vlog2.f32 %v47_v28  ;;  %v51_v32 = vadd.f32 1.0, %v50_v30  ;;  %vm266_vm0 = vcmp.lt.f32.partialorder %v53_v34, 0.0004427343 }
  0x19   :  { %212 = vlog2.f32 %v56_v29  ;;  %v60_v35 = vadd.f32 1.0, %v59_v31  ;;  %vm63_vm1 = vcmp.lt.f32.partialorder %v62_v37, 0.0004427343 }
  0x1a   :  { %v52_v42 = vmul.f32 %v203_v26, %v51_v32 }
  0x1b   :  { %v61_v46 = vmul.f32 %v205_v27, %v60_v35  ;;  %v158_v20 = vld [vmem:[#allocation2 + $0x3] sm:$0x1] }
  0x1c   :  { %v159_v24 = vsel %vm119_vm4, %v158_v20, 0.0 }
  0x21   :  { %v207_v33 = vpop.eup %206 }
  0x22   :  { %v209_v36 = vpop.eup %208  ;;  %v84_v38 = vmul.f32 %v207_v33, %v19_v7 }
  0x23   :  { %v96_v39 = vadd.f32 %v209_v36, %v207_v33  ;;  %v85_v40 = vmul.f32 %v209_v36, %v20_v8  ;;  %v83_v8 = vld [vmem:[#allocation2 + $0x1] sm:$0x1] }
  0x25   :  { %v211_v43 = vpop.eup %210  ;;  %v97_v44 = vrot.slane %v96_v39, 4  ;;  %v86_v47 = vadd.f32 %v85_v40, %v84_v38 }
  0x26   :  { %v213_v48 = vpop.eup %212  ;;  %v49_v50 = vmul.f32 0.6931472, %v211_v43 }
  0x27   :  { %v98_v51 = vadd.f32 %v97_v44, %v96_v39  ;;  %v58_v52 = vmul.f32 0.6931472, %v213_v48  ;;  %v87_v53 = vrot.slane %v86_v47, 4 }
  0x28   :  { %v55_v54 = vsel %vm266_vm0, %v52_v42, %v49_v50 }
  0x29   :  { %v99_v57 = vrot.slane %v98_v51, 2  ;;  %v64_v58 = vsel %vm63_vm1, %v61_v46, %v58_v52  ;;  %v65_v59 = vadd.f32 %v55_v54, %v33_v41  ;;  %v88_v60 = vadd.f32 %v87_v53, %v86_v47 }
  0x2a   :  { %v66_v61 = vadd.f32 %v64_v58, %v34_v49 }
  0x2b   :  { %v100_v62 = vadd.f32 %v99_v57, %v98_v51  ;;  %v67_v63 = vsel %vm35_vm2, %v248_v0, %v65_v59  ;;  %v89_v2 = vrot.slane %v88_v60, 2 }
  0x2c   :  { %v68_v3 = vsel %vm36_vm3, %v253_v1, %v66_v61  ;;  %v71_v4 = vsub.f32 %v67_v63, %v69_v55 }
  0x2d   :  { %v101_v5 = vrot.slane %v100_v62, 1  ;;  %v72_v6 = vsub.f32 %v68_v3, %v70_v56  ;;  %v90_v9 = vadd.f32 %v89_v2, %v88_v60 }
  0x2f   :  { %v102_v11 = vadd.f32 %v101_v5, %v100_v62  ;;  %v74_v7 = vadd.f32 %v72_v6, %v71_v4  ;;  %v91_v12 = vrot.slane %v90_v9, 1 }
  0x31   :  { %v103_v13 = vadd.f32 %v102_v11, %v95_v10  ;;  %v75_v14 = vrot.slane %v74_v7, 4  ;;  %v92_v15 = vadd.f32 %v91_v12, %v90_v9 }
  0x33   :  { %104 = vst [vmem:[#allocation2 + $0x2] sm:$0x1] %v103_v13  ;;  %v76_v16 = vadd.f32 %v75_v14, %v74_v7  ;;  %v93_v17 = vadd.f32 %v92_v15, %v83_v8 }
  0x35   :  { %v77_v18 = vrot.slane %v76_v16, 2  ;;  %94 = vst [vmem:[#allocation2 + $0x1] sm:$0x1] %v93_v17 }
  0x37   :  { %v78_v0 = vadd.f32 %v77_v18, %v76_v16 }
  0x39   :  { %v79_v1 = vrot.slane %v78_v0, 1 }
  0x3a   :  { %v145_v19 = vld [vmem:[#allocation2 + $0x2] sm:$0x1] }
  0x3b   :  { %v146_v22 = vsel %vm119_vm4, %v145_v19, 0.0  ;;  %v80_v23 = vadd.f32 %v79_v1, %v78_v0 }
  0x3c   :  { %147 = vadd.xlane.f32.xlu1 %v146_v22  ;;  %v132_v27 = vld [vmem:[#allocation2 + $0x1] sm:$0x1] }
  0x3d   :  { %v81_v25 = vadd.f32 %v80_v23, %v73_v21  ;;  %v133_v29 = vsel %vm119_vm4, %v132_v27, 0.0 }
  0x3f   :  { %82 = vst [vmem:[#allocation2] sm:$0x1] %v81_v25 }
  0x40   :  { %160 = vadd.xlane.f32.xlu1 %v159_v24 }
  0x46   :  { %v118_v26 = vld [vmem:[#allocation2] sm:$0x1] }
  0x47   :  { %v120_v28 = vsel %vm119_vm4, %v118_v26, 0.0 }
  0x48   :  { %121 = vadd.xlane.f32.xlu0 %v120_v28 }
  0x4c   :  { %134 = vadd.xlane.f32.xlu0 %v133_v29 }
  0xc5   :  { %v148_v30 = vpop.xlane.xlu1 %147 }
  0xc6   :  { %v149_v32 = vrot.slane %v148_v30, 4 }
  0xc8   :  { %v150_v34 = vadd.f32 %v149_v32, %v148_v30 }
  0xc9   :  { %v161_v31 = vpop.xlane.xlu1 %160 }
  0xca   :  { %v162_v33 = vrot.slane %v161_v31, 4  ;;  %v151_v39 = vrot.slane %v150_v34, 2 }
  0xcc   :  { %v163_v36 = vadd.f32 %v162_v33, %v161_v31  ;;  %v152_v46 = vadd.f32 %v151_v39, %v150_v34 }
  0xce   :  { %v164_v41 = vrot.slane %v163_v36, 2  ;;  %v153_v52 = vrot.slane %v152_v46, 1 }
  0xd0   :  { %v165_v47 = vadd.f32 %v164_v41, %v163_v36  ;;  %v154_v56 = vadd.f32 %v153_v52, %v152_v46 }
  0xd1   :  { %v122_v35 = vpop.xlane.xlu0 %121 }
  0xd2   :  { %v123_v37 = vrot.slane %v122_v35, 4  ;;  %v166_v54 = vrot.slane %v165_v47, 1 }
  0xd4   :  { %v124_v38 = vadd.f32 %v123_v37, %v122_v35  ;;  %v167_v57 = vadd.f32 %v166_v54, %v165_v47 }
  0xd5   :  { %v135_v40 = vpop.xlane.xlu0 %134 }
  0xd6   :  { %v125_v42 = vrot.slane %v124_v38, 2  ;;  %v136_v43 = vrot.slane %v135_v40, 4 }
  0xd8   :  { %v137_v44 = vadd.f32 %v136_v43, %v135_v40  ;;  %v126_v45 = vadd.f32 %v125_v42, %v124_v38 }
  0xda   :  { %v138_v48 = vrot.slane %v137_v44, 2  ;;  %v127_v49 = vrot.slane %v126_v45, 1 }
  0xdc   :  { %v139_v50 = vadd.f32 %v138_v48, %v137_v44  ;;  %v128_v51 = vadd.f32 %v127_v49, %v126_v45 }
  0xde   :  { %188 = vpush %v128_v51  ;;  %v140_v53 = vrot.slane %v139_v50, 1 }
  0xe0   :  { %v141_v55 = vadd.f32 %v140_v53, %v139_v50 }
  0xe2   :  { %190 = vpush %v141_v55 }
  0xe3   :  { %192 = vpush %v154_v56 }
  0xe4   :  { %194 = vpush %v167_v57 }
 0x10f   :  { %s189_s0 = spop %188 }
 0x110   :  { %131 = sst [smem:[#allocation3]] %s189_s0 }
 0x113   :  { %s191_s19 = spop %190 }
 0x114   :  { %144 = sst [smem:[#allocation3 + $0x1]] %s191_s19  ;;  %s193_s20 = spop %192 }
 0x115   :  { %157 = sst [smem:[#allocation3 + $0x2]] %s193_s20  ;;  %s195_s21 = spop %194 }
 0x116   :  { %170 = sst [smem:[#allocation3 + $0x3]] %s195_s21 }
 0x117   :  { %225 = shalt.err (!%p222_p4)
}
 0x118   :  { %s229_s23 = smov [#allocation3]  }
 0x119   :  { %180 = dma.smem_to_vmem %s229_s23, 16, %s178_s18, [#allocation4]  }
 0x11a   :  { %226 = dma.done.wait [#allocation4], 16  }
 0x11b   :  { %227 = vsyncadd [#allocation4], 4294967280 }
 0x11c   :  { %184 = sfence }
 0x11d   :  { %185 = vsyncpa [#allocation4], 1 }

</bundles_post_ra>
